<compile_context>
chip_gen: v7x
topology: tpu7x:2x2x1
jax: 0.10.0
libtpu: 0.0.40
codegen_flags: <defaults>
</compile_context>

<pallas_src>
import functools

import jax
import jax.numpy as jnp
import numpy as np
from jax import lax
from jax.experimental import pallas as pl
from jax.experimental.pallas import tpu as pltpu


# ---------------------------------------------------------------------------
# Config (mirrors the cfg fields used by AnchorFreeLoss.__init__)
# ---------------------------------------------------------------------------
NUM_SAMPLE_FRAME = 16          # cfg.DATA.NUM_SAMPLE_FRAME
NUM_CLIP_FEATURE = 16          # == NUM_SAMPLE_FRAME in this module
WINDOW_SIZE = 16               # cfg.DATA.WINDOW_SIZE (== T)
LAMBDAS = (1.0, 1.0, 1.0, 1.0) # cfg.LOSS.LAMBDAS (default [1.0]*4)
FOCAL_ALPHA = 0.25             # torchvision sigmoid_focal_loss defaults
FOCAL_GAMMA = 2.0              # realized as an explicit square in the kernel


def _bce_with_logits(logits, targets):
    # Numerically stable BCE-with-logits (matches F.binary_cross_entropy_with_logits)
    return (jnp.maximum(logits, 0.0) - logits * targets
            + jnp.log1p(jnp.exp(-jnp.abs(logits))))


def _fast_recip(x):
    # EUP approx reciprocal + one Newton-Raphson refinement: error -> O(err^2)
    # (<~2^-16 relative), cheaper than the exact-divide lowering but still well
    # inside the 1e-4-level reference tolerance.
    r = pl.reciprocal(x, approx=True)
    return r * (2.0 - x * r)


def _anchor_free_loss_kernel(loc_ref, conf_ref, ctr_ref, clip_ref, label_ref, out_ref,
                             *, num_sample_frame, num_clip_feature, clip_offset, lambdas):
    B, T, _ = loc_ref.shape

    # Full-array loads; fields live in their native (B, T, {1,2}) layouts so every
    # slice below is either a whole tile or a width-1 lane slice (no relayouts).
    loc = loc_ref[...]            # (B, T, 2)  localization offsets
    conf = conf_ref[...]          # (B, T, 1)  confidence logits
    ctr = ctr_ref[...]            # (B, T, 1)  centerness logits
    clip_pred = clip_ref[...]     # (B, 1, 1)  clip-level logits
    lab = label_ref[...]          # (B, 1, 2)  normalized [start, end]

    loc_s = loc[:, :, 0:1]                                            # (B, T, 1)
    loc_e = loc[:, :, 1:2]                                            # (B, T, 1)
    start_gt = lab[:, :, 0:1] * jnp.float32(num_clip_feature)         # (B, 1, 1)
    end_gt = lab[:, :, 1:2] * jnp.float32(num_clip_feature)           # (B, 1, 1)

    # center[b, t, 0] = clip_offset + t + 0.5 (num_clip_feature == num_sample_frame,
    # so no offset rescaling); generated on-chip instead of being DMA'd in.
    center = (lax.broadcasted_iota(jnp.int32, (B, T, 1), 1).astype(jnp.float32)
              + jnp.float32(clip_offset + 0.5))

    # foreground mask: center inside [start_gt, end_gt]
    conf_gt = jnp.logical_and(center <= end_gt, center >= start_gt)   # (B, T, 1)
    mask = conf_gt.astype(jnp.float32)

    # predicted boundaries
    pred_start = jnp.maximum(center - loc_s, 0.0)
    pred_end = jnp.minimum(center + loc_e, jnp.float32(num_sample_frame))

    # centerness target (eps floor avoids 0/0 NaN on degenerate segments)
    left_len = center - start_gt
    right_len = end_gt - center
    denom = jnp.maximum(jnp.maximum(left_len, right_len), 1e-6)
    centerness_gt = jnp.minimum(left_len, right_len) * _fast_recip(denom)
    centerness_gt = jnp.where(centerness_gt < 0.0, 0.0, centerness_gt)

    # IoU between predicted and gt segments
    inter = jnp.maximum(jnp.minimum(pred_end, end_gt) - jnp.maximum(pred_start, start_gt), 0.0)
    union = jnp.maximum(jnp.maximum(pred_end, end_gt) - jnp.minimum(pred_start, start_gt), 0.001)
    iou = inter * _fast_recip(union)

    # ---- fused reductions ----------------------------------------------------
    # One sublane reduce for per-clip foreground counts; reused for n_fg and clip_gt.
    fg_per_clip = jnp.sum(mask, axis=1, keepdims=True)                # (B, 1, 1)
    n_fg = jnp.sum(fg_per_clip)                                       # scalar
    inv_N = 1.0 / jnp.maximum(n_fg, 1.0)                              # single scalar divide

    # Pre-weight the three per-frame terms and do ONE full reduction.
    # (conf_gt.numel() > 0 always holds here, so the torch else-branch is dead code.)
    w_loc = lambdas[0] * inv_N
    w_conf = jnp.float32(lambdas[1] / (B * T))
    w_ctr = lambdas[2] * inv_N
    weighted = (w_loc * ((1.0 - iou) * mask)                           # localization
                + w_conf * _bce_with_logits(conf, centerness_gt)       # confidence (mean)
                + w_ctr * (_bce_with_logits(ctr, iou) * mask))         # centerness (fg sum)
    main_loss = jnp.sum(weighted)

    # clip-level focal loss (torchvision sigmoid_focal_loss, alpha=0.25, gamma=2, mean)
    clip_gt = fg_per_clip * jnp.float32(1.0 / T)                       # (B, 1, 1)
    p = jax.nn.sigmoid(clip_pred)
    ce = _bce_with_logits(clip_pred, clip_gt)
    p_t = p * clip_gt + (1.0 - p) * (1.0 - clip_gt)
    one_m_pt = 1.0 - p_t
    alpha_t = FOCAL_ALPHA * clip_gt + (1.0 - FOCAL_ALPHA) * (1.0 - clip_gt)
    clip_level_loss = jnp.sum(alpha_t * ce * one_m_pt * one_m_pt) * jnp.float32(1.0 / B)

    out_ref[0, 0] = main_loss + lambdas[3] * clip_level_loss


def anchor_free_loss(loc, conf, centerness, clip_level_pred, label, clip_offset):
    """loc: (B,T,2) f32, conf: (B,T,1), centerness: (B,T), clip_level_pred: (B,1),
       label: (B,2) in [0,1], clip_offset: python int (static)."""
    B, T, two = loc.shape
    assert two == 2 and T == WINDOW_SIZE
    assert NUM_CLIP_FEATURE == NUM_SAMPLE_FRAME
    # Match the torch arange-slice semantics (center must not run past num_clip_feature).
    assert 0 <= int(clip_offset) and int(clip_offset) + WINDOW_SIZE <= NUM_CLIP_FEATURE

    f32 = jnp.float32
    # ONLY free (bitcast) unit-dim reshapes here — no strided slices / concat / pad —
    # so XLA hands the original buffers straight to the kernel (no extra fusion launch,
    # no HBM round trip).
    loc3 = loc.astype(f32)                                  # (B, T, 2)   as-is
    conf3 = conf.astype(f32)                                # (B, T, 1)   as-is
    ctr3 = centerness.astype(f32).reshape(B, T, 1)          # bitcast view
    clip3 = clip_level_pred.astype(f32).reshape(B, 1, 1)    # bitcast view
    label3 = label.astype(f32).reshape(B, 1, 2)             # bitcast view

    kernel = functools.partial(
        _anchor_free_loss_kernel,
        num_sample_frame=NUM_SAMPLE_FRAME,
        num_clip_feature=NUM_CLIP_FEATURE,
        clip_offset=int(clip_offset),
        lambdas=LAMBDAS,
    )

    n_elems = loc3.size + conf3.size + ctr3.size + clip3.size + label3.size
    cost = pl.CostEstimate(
        flops=int(60 * B * T),            # all-VPU elementwise work, rough
        transcendentals=int(8 * B * T),   # exp/log1p in BCEs, sigmoid, rcp seeds
        bytes_accessed=int(4 * n_elems + 4),
    )

    out = pl.pallas_call(
        kernel,
        out_shape=jax.ShapeDtypeStruct((1, 1), jnp.float32),
        in_specs=[pl.BlockSpec(memory_space=pltpu.MemorySpace.VMEM)] * 5,
        out_specs=pl.BlockSpec(memory_space=pltpu.MemorySpace.SMEM),
        cost_estimate=cost,
    )(loc3, conf3, ctr3, clip3, label3)
    return out[0, 0]


def anchor_free_loss_ref(loc, conf, centerness, clip_level_pred, label, clip_offset):
    """Pure-JAX reference replicating the PyTorch forward for verification."""
    B, T, _ = loc.shape
    center = (jnp.arange(NUM_CLIP_FEATURE, dtype=jnp.float32) + 0.5)
    center = jnp.broadcast_to(center[clip_offset:clip_offset + WINDOW_SIZE][None, :], (B, T))
    lab = label * NUM_CLIP_FEATURE
    conf_gt = (center <= lab[:, 1:2]) & (center >= lab[:, 0:1])
    pred_start = jnp.maximum(center - loc[..., 0], 0.0)
    pred_end = jnp.minimum(center + loc[..., 1], float(NUM_SAMPLE_FRAME))
    start_gt, end_gt = lab[:, 0:1], lab[:, 1:2]
    left_len, right_len = center - start_gt, end_gt - center
    cgt = jnp.minimum(left_len, right_len) / jnp.maximum(left_len, right_len)
    cgt = jnp.where(cgt < 0, 0.0, cgt)
    i = jnp.maximum(jnp.minimum(pred_end, end_gt) - jnp.maximum(pred_start, start_gt), 0.0)
    u = jnp.maximum(jnp.maximum(pred_end, end_gt) - jnp.minimum(pred_start, start_gt), 0.001)
    iou = i / u
    m = conf_gt.astype(jnp.float32)
    N = jnp.maximum(jnp.sum(m), 1.0)
    loc_loss = jnp.sum((1.0 - iou) * m) / N
    conf_loss = jnp.mean(_bce_with_logits(conf.reshape(B, T), cgt))
    centerness_loss = jnp.sum(_bce_with_logits(centerness.reshape(B, T), iou) * m) / N
    clip_gt = jnp.sum(m, axis=1, keepdims=True) / T
    logits = clip_level_pred
    p = jax.nn.sigmoid(logits)
    ce = _bce_with_logits(logits, clip_gt)
    p_t = p * clip_gt + (1 - p) * (1 - clip_gt)
    focal = (FOCAL_ALPHA * clip_gt + (1 - FOCAL_ALPHA) * (1 - clip_gt)) * ce * (1 - p_t) ** 2
    clip_level_loss = jnp.mean(focal)
    return (LAMBDAS[0] * loc_loss + LAMBDAS[1] * conf_loss
            + LAMBDAS[2] * centerness_loss + LAMBDAS[3] * clip_level_loss)


if __name__ == "__main__":
    B, T = 2, WINDOW_SIZE
    key = jax.random.PRNGKey(0)
    k1, k2, k3, k4, k5, k6 = jax.random.split(key, 6)

    loc = jax.random.uniform(k1, (B, T, 2), jnp.float32, minval=0.0, maxval=3.0)
    conf = jax.random.normal(k2, (B, T, 1), jnp.float32)
    centerness = jax.random.normal(k3, (B, T), jnp.float32)
    clip_level_pred = jax.random.normal(k4, (B, 1), jnp.float32)
    start = jax.random.uniform(k5, (B, 1), jnp.float32, minval=0.1, maxval=0.4)
    end = jax.random.uniform(k6, (B, 1), jnp.float32, minval=0.6, maxval=0.9)
    label = jnp.concatenate([start, end], axis=1)   # normalized [0,1] segment bounds
    clip_offset = 0                                  # static python int

    loss = anchor_free_loss(loc, conf, centerness, clip_level_pred, label, clip_offset)
    loss = jax.block_until_ready(loss)

    ref = anchor_free_loss_ref(loc, conf, centerness, clip_level_pred, label, clip_offset)
    # Tolerance leaves headroom for the approx-reciprocal (+1 Newton step) path,
    # whose relative error is <~2^-16 per divide.
    np.testing.assert_allclose(np.asarray(loss), np.asarray(ref), rtol=3e-4, atol=2e-5)

    print("KERNEL_OK")
</pallas_src>

<mosaic_0001>
module attributes {stable_mosaic.version = 11 : i64} {
  func.func @_anchor_free_loss_kernel(%arg0: memref<2x16x2xf32, #tpu.memory_space<vmem>>, %arg1: memref<2x16x1xf32, #tpu.memory_space<vmem>>, %arg2: memref<2x16x1xf32, #tpu.memory_space<vmem>>, %arg3: memref<2x1x1xf32, #tpu.memory_space<vmem>>, %arg4: memref<2x1x2xf32, #tpu.memory_space<vmem>>, %arg5: memref<1x1xf32, #tpu.memory_space<smem>>) attributes {dimension_semantics = [], scalar_prefetch = 0 : i64, scratch_operands = 0 : i64, tpu.core_type = #tpu.core_type<tc>} {
    %c0 = arith.constant 0 : index
    %c0_0 = arith.constant 0 : index
    %c0_1 = arith.constant 0 : index
    %0 = vector.load %arg0[%c0, %c0_0, %c0_1] : memref<2x16x2xf32, #tpu.memory_space<vmem>>, vector<2x16x2xf32>
    %c0_2 = arith.constant 0 : index
    %c0_3 = arith.constant 0 : index
    %c0_4 = arith.constant 0 : index
    %1 = vector.load %arg1[%c0_2, %c0_3, %c0_4] : memref<2x16x1xf32, #tpu.memory_space<vmem>>, vector<2x16x1xf32>
    %c0_5 = arith.constant 0 : index
    %c0_6 = arith.constant 0 : index
    %c0_7 = arith.constant 0 : index
    %2 = vector.load %arg2[%c0_5, %c0_6, %c0_7] : memref<2x16x1xf32, #tpu.memory_space<vmem>>, vector<2x16x1xf32>
    %c0_8 = arith.constant 0 : index
    %c0_9 = arith.constant 0 : index
    %c0_10 = arith.constant 0 : index
    %3 = vector.load %arg3[%c0_8, %c0_9, %c0_10] : memref<2x1x1xf32, #tpu.memory_space<vmem>>, vector<2x1x1xf32>
    %c0_11 = arith.constant 0 : index
    %c0_12 = arith.constant 0 : index
    %c0_13 = arith.constant 0 : index
    %4 = vector.load %arg4[%c0_11, %c0_12, %c0_13] : memref<2x1x2xf32, #tpu.memory_space<vmem>>, vector<2x1x2xf32>
    %5 = vector.extract_strided_slice %0 {offsets = [0, 0, 0], sizes = [2, 16, 1], strides = [1, 1, 1]} : vector<2x16x2xf32> to vector<2x16x1xf32>
    %6 = vector.extract_strided_slice %0 {offsets = [0, 0, 1], sizes = [2, 16, 1], strides = [1, 1, 1]} : vector<2x16x2xf32> to vector<2x16x1xf32>
    %7 = vector.extract_strided_slice %4 {offsets = [0, 0, 0], sizes = [2, 1, 1], strides = [1, 1, 1]} : vector<2x1x2xf32> to vector<2x1x1xf32>
    %cst = arith.constant 1.600000e+01 : f32
    %8 = vector.broadcast %cst : f32 to vector<2x1x1xf32>
    %9 = arith.mulf %7, %8 : vector<2x1x1xf32>
    %10 = vector.extract_strided_slice %4 {offsets = [0, 0, 1], sizes = [2, 1, 1], strides = [1, 1, 1]} : vector<2x1x2xf32> to vector<2x1x1xf32>
    %cst_14 = arith.constant 1.600000e+01 : f32
    %11 = vector.broadcast %cst_14 : f32 to vector<2x1x1xf32>
    %12 = arith.mulf %10, %11 : vector<2x1x1xf32>
    %13 = tpu.iota {dimensions = array<i32: 1>} : vector<2x16x1xi32>
    %14 = arith.sitofp %13 : vector<2x16x1xi32> to vector<2x16x1xf32>
    %cst_15 = arith.constant 5.000000e-01 : f32
    %15 = vector.broadcast %cst_15 : f32 to vector<2x16x1xf32>
    %16 = arith.addf %14, %15 : vector<2x16x1xf32>
    %17 = vector.broadcast %12 : vector<2x1x1xf32> to vector<2x16x1xf32>
    %18 = arith.cmpf ole, %16, %17 : vector<2x16x1xf32>
    %19 = vector.broadcast %9 : vector<2x1x1xf32> to vector<2x16x1xf32>
    %20 = arith.cmpf oge, %16, %19 : vector<2x16x1xf32>
    %21 = arith.andi %18, %20 : vector<2x16x1xi1>
    %22 = arith.extui %21 : vector<2x16x1xi1> to vector<2x16x1xi32>
    %23 = arith.sitofp %22 : vector<2x16x1xi32> to vector<2x16x1xf32>
    %24 = arith.subf %16, %5 : vector<2x16x1xf32>
    %cst_16 = arith.constant 0.000000e+00 : f32
    %25 = vector.broadcast %cst_16 : f32 to vector<2x16x1xf32>
    %26 = arith.maximumf %24, %25 : vector<2x16x1xf32>
    %27 = arith.addf %16, %6 : vector<2x16x1xf32>
    %cst_17 = arith.constant 1.600000e+01 : f32
    %28 = vector.broadcast %cst_17 : f32 to vector<2x16x1xf32>
    %29 = arith.minimumf %27, %28 : vector<2x16x1xf32>
    %30 = vector.broadcast %9 : vector<2x1x1xf32> to vector<2x16x1xf32>
    %31 = arith.subf %16, %30 : vector<2x16x1xf32>
    %32 = vector.broadcast %12 : vector<2x1x1xf32> to vector<2x16x1xf32>
    %33 = arith.subf %32, %16 : vector<2x16x1xf32>
    %34 = arith.maximumf %31, %33 : vector<2x16x1xf32>
    %cst_18 = arith.constant 9.99999997E-7 : f32
    %35 = vector.broadcast %cst_18 : f32 to vector<2x16x1xf32>
    %36 = arith.maximumf %34, %35 : vector<2x16x1xf32>
    %37 = arith.minimumf %31, %33 : vector<2x16x1xf32>
    %38 = tpu.reciprocal %36 {approx = true} : vector<2x16x1xf32> -> vector<2x16x1xf32>
    %39 = arith.mulf %36, %38 : vector<2x16x1xf32>
    %cst_19 = arith.constant 2.000000e+00 : f32
    %40 = vector.broadcast %cst_19 : f32 to vector<2x16x1xf32>
    %41 = arith.subf %40, %39 : vector<2x16x1xf32>
    %42 = arith.mulf %38, %41 : vector<2x16x1xf32>
    %43 = arith.mulf %37, %42 : vector<2x16x1xf32>
    %cst_20 = arith.constant 0.000000e+00 : f32
    %44 = vector.broadcast %cst_20 : f32 to vector<2x16x1xf32>
    %45 = arith.cmpf olt, %43, %44 : vector<2x16x1xf32>
    %cst_21 = arith.constant 0.000000e+00 : f32
    %46 = vector.broadcast %cst_21 : f32 to vector<2x16x1xf32>
    %47 = arith.select %45, %46, %43 : vector<2x16x1xi1>, vector<2x16x1xf32>
    %48 = vector.broadcast %12 : vector<2x1x1xf32> to vector<2x16x1xf32>
    %49 = arith.minimumf %29, %48 : vector<2x16x1xf32>
    %50 = vector.broadcast %9 : vector<2x1x1xf32> to vector<2x16x1xf32>
    %51 = arith.maximumf %26, %50 : vector<2x16x1xf32>
    %52 = arith.subf %49, %51 : vector<2x16x1xf32>
    %cst_22 = arith.constant 0.000000e+00 : f32
    %53 = vector.broadcast %cst_22 : f32 to vector<2x16x1xf32>
    %54 = arith.maximumf %52, %53 : vector<2x16x1xf32>
    %55 = vector.broadcast %12 : vector<2x1x1xf32> to vector<2x16x1xf32>
    %56 = arith.maximumf %29, %55 : vector<2x16x1xf32>
    %57 = vector.broadcast %9 : vector<2x1x1xf32> to vector<2x16x1xf32>
    %58 = arith.minimumf %26, %57 : vector<2x16x1xf32>
    %59 = arith.subf %56, %58 : vector<2x16x1xf32>
    %cst_23 = arith.constant 1.000000e-03 : f32
    %60 = vector.broadcast %cst_23 : f32 to vector<2x16x1xf32>
    %61 = arith.maximumf %59, %60 : vector<2x16x1xf32>
    %62 = tpu.reciprocal %61 {approx = true} : vector<2x16x1xf32> -> vector<2x16x1xf32>
    %63 = arith.mulf %61, %62 : vector<2x16x1xf32>
    %cst_24 = arith.constant 2.000000e+00 : f32
    %64 = vector.broadcast %cst_24 : f32 to vector<2x16x1xf32>
    %65 = arith.subf %64, %63 : vector<2x16x1xf32>
    %66 = arith.mulf %62, %65 : vector<2x16x1xf32>
    %67 = arith.mulf %54, %66 : vector<2x16x1xf32>
    %cst_25 = arith.constant dense<0.000000e+00> : vector<2x1xf32>
    %68 = vector.multi_reduction <add>, %23, %cst_25 [1] : vector<2x16x1xf32> to vector<2x1xf32>
    %69 = vector.shape_cast %68 : vector<2x1xf32> to vector<2x1x1xf32>
    %70 = vector.shape_cast %69 : vector<2x1x1xf32> to vector<1x2x1x1xf32>
    %cst_26 = arith.constant dense<0.000000e+00> : vector<1xf32>
    %71 = vector.multi_reduction <add>, %70, %cst_26 [1, 2, 3] : vector<1x2x1x1xf32> to vector<1xf32>
    %72 = vector.shape_cast %71 : vector<1xf32> to vector<1x1x1x1xf32>
    %73 = vector.extract %72[0, 0, 0, 0] : f32 from vector<1x1x1x1xf32>
    %cst_27 = arith.constant 1.000000e+00 : f32
    %74 = arith.maximumf %73, %cst_27 : f32
    %cst_28 = arith.constant 1.000000e+00 : f32
    %75 = arith.divf %cst_28, %74 : f32
    %cst_29 = arith.constant 1.000000e+00 : f32
    %76 = arith.mulf %cst_29, %75 : f32
    %cst_30 = arith.constant 1.000000e+00 : f32
    %77 = arith.mulf %cst_30, %75 : f32
    %cst_31 = arith.constant 1.000000e+00 : f32
    %78 = vector.broadcast %cst_31 : f32 to vector<2x16x1xf32>
    %79 = arith.subf %78, %67 : vector<2x16x1xf32>
    %80 = arith.mulf %79, %23 : vector<2x16x1xf32>
    %81 = vector.broadcast %76 : f32 to vector<2x16x1xf32>
    %82 = arith.mulf %81, %80 : vector<2x16x1xf32>
    %cst_32 = arith.constant 0.000000e+00 : f32
    %83 = vector.broadcast %cst_32 : f32 to vector<2x16x1xf32>
    %84 = arith.maximumf %1, %83 : vector<2x16x1xf32>
    %85 = arith.mulf %1, %47 : vector<2x16x1xf32>
    %86 = arith.subf %84, %85 : vector<2x16x1xf32>
    %87 = math.absf %1 : vector<2x16x1xf32>
    %cst_33 = arith.constant 0.000000e+00 : f32
    %88 = vector.broadcast %cst_33 : f32 to vector<2x16x1xf32>
    %89 = arith.subf %88, %87 : vector<2x16x1xf32>
    %90 = math.exp %89 : vector<2x16x1xf32>
    %91 = math.log1p %90 : vector<2x16x1xf32>
    %92 = arith.addf %86, %91 : vector<2x16x1xf32>
    %cst_34 = arith.constant 3.125000e-02 : f32
    %93 = vector.broadcast %cst_34 : f32 to vector<2x16x1xf32>
    %94 = arith.mulf %93, %92 : vector<2x16x1xf32>
    %95 = arith.addf %82, %94 : vector<2x16x1xf32>
    %cst_35 = arith.constant 0.000000e+00 : f32
    %96 = vector.broadcast %cst_35 : f32 to vector<2x16x1xf32>
    %97 = arith.maximumf %2, %96 : vector<2x16x1xf32>
    %98 = arith.mulf %2, %67 : vector<2x16x1xf32>
    %99 = arith.subf %97, %98 : vector<2x16x1xf32>
    %100 = math.absf %2 : vector<2x16x1xf32>
    %cst_36 = arith.constant 0.000000e+00 : f32
    %101 = vector.broadcast %cst_36 : f32 to vector<2x16x1xf32>
    %102 = arith.subf %101, %100 : vector<2x16x1xf32>
    %103 = math.exp %102 : vector<2x16x1xf32>
    %104 = math.log1p %103 : vector<2x16x1xf32>
    %105 = arith.addf %99, %104 : vector<2x16x1xf32>
    %106 = arith.mulf %105, %23 : vector<2x16x1xf32>
    %107 = vector.broadcast %77 : f32 to vector<2x16x1xf32>
    %108 = arith.mulf %107, %106 : vector<2x16x1xf32>
    %109 = arith.addf %95, %108 : vector<2x16x1xf32>
    %110 = vector.shape_cast %109 : vector<2x16x1xf32> to vector<1x2x16x1xf32>
    %cst_37 = arith.constant dense<0.000000e+00> : vector<1xf32>
    %111 = vector.multi_reduction <add>, %110, %cst_37 [1, 2, 3] : vector<1x2x16x1xf32> to vector<1xf32>
    %112 = vector.shape_cast %111 : vector<1xf32> to vector<1x1x1x1xf32>
    %113 = vector.extract %112[0, 0, 0, 0] : f32 from vector<1x1x1x1xf32>
    %cst_38 = arith.constant 6.250000e-02 : f32
    %114 = vector.broadcast %cst_38 : f32 to vector<2x1x1xf32>
    %115 = arith.mulf %69, %114 : vector<2x1x1xf32>
    %116 = arith.negf %3 : vector<2x1x1xf32>
    %117 = math.exp %116 : vector<2x1x1xf32>
    %cst_39 = arith.constant 1.000000e+00 : f32
    %118 = vector.broadcast %cst_39 : f32 to vector<2x1x1xf32>
    %119 = arith.addf %118, %117 : vector<2x1x1xf32>
    %120 = arith.divf %118, %119 : vector<2x1x1xf32>
    %cst_40 = arith.constant 0.000000e+00 : f32
    %121 = vector.broadcast %cst_40 : f32 to vector<2x1x1xf32>
    %122 = arith.maximumf %3, %121 : vector<2x1x1xf32>
    %123 = arith.mulf %3, %115 : vector<2x1x1xf32>
    %124 = arith.subf %122, %123 : vector<2x1x1xf32>
    %125 = math.absf %3 : vector<2x1x1xf32>
    %cst_41 = arith.constant 0.000000e+00 : f32
    %126 = vector.broadcast %cst_41 : f32 to vector<2x1x1xf32>
    %127 = arith.subf %126, %125 : vector<2x1x1xf32>
    %128 = math.exp %127 : vector<2x1x1xf32>
    %129 = math.log1p %128 : vector<2x1x1xf32>
    %130 = arith.addf %124, %129 : vector<2x1x1xf32>
    %131 = arith.mulf %120, %115 : vector<2x1x1xf32>
    %cst_42 = arith.constant 1.000000e+00 : f32
    %132 = vector.broadcast %cst_42 : f32 to vector<2x1x1xf32>
    %133 = arith.subf %132, %120 : vector<2x1x1xf32>
    %cst_43 = arith.constant 1.000000e+00 : f32
    %134 = vector.broadcast %cst_43 : f32 to vector<2x1x1xf32>
    %135 = arith.subf %134, %115 : vector<2x1x1xf32>
    %136 = arith.mulf %133, %135 : vector<2x1x1xf32>
    %137 = arith.addf %131, %136 : vector<2x1x1xf32>
    %cst_44 = arith.constant 1.000000e+00 : f32
    %138 = vector.broadcast %cst_44 : f32 to vector<2x1x1xf32>
    %139 = arith.subf %138, %137 : vector<2x1x1xf32>
    %cst_45 = arith.constant 2.500000e-01 : f32
    %140 = vector.broadcast %cst_45 : f32 to vector<2x1x1xf32>
    %141 = arith.mulf %140, %115 : vector<2x1x1xf32>
    %cst_46 = arith.constant 1.000000e+00 : f32
    %142 = vector.broadcast %cst_46 : f32 to vector<2x1x1xf32>
    %143 = arith.subf %142, %115 : vector<2x1x1xf32>
    %cst_47 = arith.constant 7.500000e-01 : f32
    %144 = vector.broadcast %cst_47 : f32 to vector<2x1x1xf32>
    %145 = arith.mulf %144, %143 : vector<2x1x1xf32>
    %146 = arith.addf %141, %145 : vector<2x1x1xf32>
    %147 = arith.mulf %146, %130 : vector<2x1x1xf32>
    %148 = arith.mulf %147, %139 : vector<2x1x1xf32>
    %149 = arith.mulf %148, %139 : vector<2x1x1xf32>
    %150 = vector.shape_cast %149 : vector<2x1x1xf32> to vector<1x2x1x1xf32>
    %cst_48 = arith.constant dense<0.000000e+00> : vector<1xf32>
    %151 = vector.multi_reduction <add>, %150, %cst_48 [1, 2, 3] : vector<1x2x1x1xf32> to vector<1xf32>
    %152 = vector.shape_cast %151 : vector<1xf32> to vector<1x1x1x1xf32>
    %153 = vector.extract %152[0, 0, 0, 0] : f32 from vector<1x1x1x1xf32>
    %cst_49 = arith.constant 5.000000e-01 : f32
    %154 = arith.mulf %153, %cst_49 : f32
    %cst_50 = arith.constant 1.000000e+00 : f32
    %155 = arith.mulf %cst_50, %154 : f32
    %156 = arith.addf %113, %155 : f32
    %c0_51 = arith.constant 0 : index
    %c0_52 = arith.constant 0 : index
    %157 = memref.load %arg5[%c0_51, %c0_52] : memref<1x1xf32, #tpu.memory_space<smem>>
    memref.store %156, %arg5[%c0_51, %c0_52] : memref<1x1xf32, #tpu.memory_space<smem>>
    return
  }
}

</mosaic_0001>

<bundles_post_ra>
// kernel: tpu_custom_call.1
= control target key start
LH: loop header
LB: loop body
LE: loop exit
PB: predicated region body
PF: predicated region fallthrough
CT: control target
= control target key end

     0   :  { %v39_v1 = vlaneseq  ;;  %s1324_s0 = inlined_call_operand.vmem [shape: f32[2,16,2], index: 0, kind: input, shape index: {}]   ;;  %s1325_s1 = inlined_call_operand.vmem [shape: f32[2,16,1], index: 1, kind: input, shape index: {}]   ;;  %s1326_s2 = inlined_call_operand.vmem [shape: f32[2,16,1], index: 2, kind: input, shape index: {}]   ;;  %s1327_s3 = inlined_call_operand.vmem [shape: f32[2,1,1], index: 3, kind: input, shape index: {}]   ;;  %s1328_s4 = inlined_call_operand.vmem [shape: f32[2,1,2], index: 4, kind: input, shape index: {}]   ;;  %s1329_s5 = inlined_call_operand.hbm [shape: f32[1,1], index: 5, kind: output, shape index: {}]  }
   0x1   :  { %v36_v0 = vld [vmem:[%s1328_s4 + $0x1] sm:$0x1]  ;;  %v35_v2 = vld [vmem:[%s1328_s4] sm:$0x1] }
   0x2   :  { %10 = vsyncpa [#allocation3], 0  ;;  %v38_v3 = vmul.f32 16.0, %v36_v0  ;;  %v928_v4 = vshrl.u32 %v39_v1, 7  ;;  %v37_v5 = vmul.f32 16.0, %v35_v2  ;;  %v885_v14 = vmov 0  }
   0x3   :  { %s886_s4 = smov 1   ;;  %vm258_vm12 = vcmask 15368   ;;  %v887_v23 = vmov 0.0   ;;  %v980_v36 = vld [vmem:[%s1324_s0] sm:$0xff]  ;;  %v888_v38 = vmov 1966171168  }
   0x4   :  { %v42_v6 = vcvt.s32.f32 %v928_v4  ;;  %v932_v7 = vsub.s32 0, %v928_v4  ;;  %v41_v8 = vadd.s32 8, %v928_v4  ;;  %v587_v39 = vunpack.c.l.s4 %v888_v38  ;;  %v985_v41 = vld [vmem:[%s1324_s0 + $0x8] sm:$0xff]  ;;  %v994_v51 = vld [vmem:[%s1324_s0 + $0x10] sm:$0xff]  ;;  %s889_s28 = smov 127   ;;  %v24_v60 = vld [vmem:[%s1324_s0 + $0x18] sm:$0xff] }
   0x5   :  { %s873_s0 = scalar_lea.hbm %s1329_s5, 16 }
   0x6   :  { %v935_v9 = vadd.f32 0.5, %v42_v6  ;;  %v938_v10 = vrot.slane %v38_v3, %v932_v7  ;;  %v941_v11 = vrot.slane %v37_v5, %v932_v7  ;;  %v43_v12 = vcvt.s32.f32 %v41_v8  ;;  %p874_p0 = scmp.ne.s32.totalorder %s1329_s5, %s873_s0  ;;  %p877_p1 = scmp.lt.u32.totalorder %s873_s0, %s1329_s5 }
   0x7   :  { %v588_v47 = vunpack.c.0.s8 %v587_v39 }
   0x8   :  { %vm64_vm0 = vcmp.ge.f32.partialorder %v935_v9, %v938_v10  ;;  %vm62_vm1 = vcmp.ge.f32.partialorder %v935_v9, %v941_v11  ;;  %v947_v13 = vadd.f32 0.5, %v43_v12  ;;  %vm60_vm4 = vcmp.le.f32.partialorder %v935_v9, %v938_v10  ;;  %p879_p2 = pnand %p877_p1, %p874_p0 }
   0x9   :  { %v68_v15 = vsel %vm64_vm0, 1, %v885_v14  ;;  %v66_v16 = vsel %vm62_vm1, 1, %v885_v14  ;;  %vm58_vm5 = vcmp.le.f32.partialorder %v935_v9, %v941_v11  ;;  %v94_v43 = vsub.f32 %v935_v9, %v980_v36 }
   0xa   :  { %74 = vrot.lane.b32.xlu1 %v68_v15, %s886_s4  ;;  %70 = vrot.lane.b32.xlu0 %v66_v16, %s886_s4  ;;  %vm65_vm2 = vcmp.ge.f32.partialorder %v947_v13, %v938_v10  ;;  %vm63_vm3 = vcmp.ge.f32.partialorder %v947_v13, %v941_v11  ;;  %vm61_vm10 = vcmp.le.f32.partialorder %v947_v13, %v938_v10  ;;  %vm285_vm1 = vcmask 0  }
   0xb   :  { %v69_v17 = vsel %vm65_vm2, 1, %v885_v14  ;;  %v67_v18 = vsel %vm63_vm3, 1, %v885_v14  ;;  %vm59_vm11 = vcmp.le.f32.partialorder %v947_v13, %v941_v11  ;;  %v95_v46 = vsub.f32 %v947_v13, %v985_v41 }
   0xc   :  { %v98_v50 = vmax.f32 %v94_v43, 0.0  ;;  %v997_v55 = vsub.s32 %v588_v47, %v928_v4  ;;  %v96_v57 = vsub.f32 %v935_v9, %v994_v51  ;;  %v97_v2 = vsub.f32 %v947_v13, %v24_v60 }
   0xd   :  { %v99_v54 = vmax.f32 %v95_v46, 0.0  ;;  %v103_v39 = vadd.f32 %v947_v13, %v985_v41  ;;  %v104_v46 = vadd.f32 %v935_v9, %v994_v51 }
   0xe   :  { %76 = vrot.lane.b32.xlu1 %v69_v17, %s886_s4  ;;  %72 = vrot.lane.b32.xlu0 %v67_v18, %s886_s4  ;;  %v210_v59 = vmin.f32 %v98_v50, %v941_v11  ;;  %v100_v1 = vmax.f32 %v96_v57, 0.0 }
   0xf   :  { %v211_v62 = vmin.f32 %v99_v54, %v941_v11  ;;  %v108_v41 = vmin.f32 %v104_v46, 16.0 }
  0x11   :  { %v208_v57 = vmax.f32 %v108_v41, %v938_v10 }
  0x7c   :  { %v75_v19 = vpop.permute.xlu1 %74  ;;  %v71_v20 = vpop.permute.xlu0 %70 }
  0x7d   :  { %vm80_vm6 = vcmp.ne.s32.totalorder %v75_v19, 0  ;;  %vm78_vm7 = vcmp.ne.s32.totalorder %v71_v20, 0 }
  0x7e   :  { %vm84_vm8 = vmand %vm60_vm4, %vm80_vm6 }
  0x7f   :  { %vm82_vm9 = vmand %vm58_vm5, %vm78_vm7  ;;  %v965_v24 = vsel %vm84_vm8, 1.0, %v887_v23 }
  0x80   :  { %v77_v21 = vpop.permute.xlu1 %76  ;;  %v73_v22 = vpop.permute.xlu0 %72  ;;  %v967_v25 = vsel %vm82_vm9, 1.0, %v887_v23  ;;  %v268_v27 = vsel %vm258_vm12, %v965_v24, 0.0 }
  0x81   :  { %vm81_vm13 = vcmp.ne.s32.totalorder %v77_v21, 0  ;;  %vm79_vm14 = vcmp.ne.s32.totalorder %v73_v22, 0  ;;  %v259_v30 = vsel %vm258_vm12, %v967_v25, 0.0  ;;  %v212_v22 = vmin.f32 %v100_v1, %v938_v10 }
  0x82   :  { %vm85_vm15 = vmand %vm61_vm10, %vm81_vm13 }
  0x83   :  { %v969_v26 = vsel %vm85_vm15, 1.0, %v887_v23  ;;  %vm83_vm0 = vmand %vm59_vm11, %vm79_vm14 }
  0x84   :  { %v269_v28 = vsel %vm258_vm12, %v969_v26, 0.0  ;;  %v973_v29 = vsel %vm83_vm0, 1.0, %v887_v23  ;;  %v101_v23 = vmax.f32 %v97_v2, 0.0  ;;  %vm551_vm0 = vcmask 7168  }
  0x85   :  { %v270_v31 = vadd.f32 %v269_v28, %v268_v27  ;;  %v260_v32 = vsel %vm258_vm12, %v973_v29, 0.0  ;;  %v178_v28 = vmax.f32 %v98_v50, %v941_v11 }
  0x86   :  { %v261_v33 = vadd.f32 %v260_v32, %v259_v30  ;;  %v213_v27 = vmin.f32 %v101_v23, %v938_v10  ;;  %v179_v30 = vmax.f32 %v99_v54, %v941_v11  ;;  %v181_v32 = vmax.f32 %v101_v23, %v938_v10 }
  0x87   :  { %v271_v34 = vrot.slane %v270_v31, 4 }
  0x88   :  { %v262_v35 = vrot.slane %v261_v33, 4 }
  0x89   :  { %v272_v37 = vadd.f32 %v271_v34, %v270_v31  ;;  %v180_v31 = vmax.f32 %v100_v1, %v938_v10  ;;  %v116_v34 = vsub.f32 %v938_v10, %v935_v9 }
  0x8a   :  { %v263_v40 = vadd.f32 %v262_v35, %v261_v33  ;;  %v115_v33 = vsub.f32 %v941_v11, %v947_v13  ;;  %v117_v35 = vsub.f32 %v938_v10, %v947_v13 }
  0x8b   :  { %v273_v42 = vrot.slane %v272_v37, 2 }
  0x8c   :  { %v264_v44 = vrot.slane %v263_v40, 2 }
  0x8d   :  { %v274_v45 = vadd.f32 %v273_v42, %v272_v37  ;;  %v102_v37 = vadd.f32 %v935_v9, %v980_v36 }
  0x8e   :  { %v265_v48 = vadd.f32 %v264_v44, %v263_v40 }
  0x8f   :  { %v275_v49 = vrot.slane %v274_v45, 1  ;;  %v106_v38 = vmin.f32 %v102_v37, 16.0 }
  0x90   :  { %v266_v52 = vrot.slane %v265_v48, 1 }
  0x91   :  { %v276_v53 = vadd.f32 %v275_v49, %v274_v45  ;;  %v206_v44 = vmax.f32 %v106_v38, %v941_v11  ;;  %v107_v45 = vmin.f32 %v103_v39, 16.0  ;;  %v174_v2 = vmin.f32 %v106_v38, %v941_v11 }
  0x92   :  { %v267_v56 = vadd.f32 %v266_v52, %v265_v48  ;;  %v105_v52 = vadd.f32 %v947_v13, %v24_v60  ;;  %v176_v38 = vmin.f32 %v108_v41, %v938_v10 }
  0x93   :  { %281 = vrot.lane.b32.xlu1 %v276_v53, %s889_s28  ;;  %v569_v58 = vmul.f32 0.0625, %v276_v53  ;;  %v207_v50 = vmax.f32 %v107_v45, %v941_v11 }
  0x94   :  { %279 = vrot.lane.b32.xlu0 %v267_v56, %s889_s28  ;;  %v568_v61 = vmul.f32 0.0625, %v267_v56 }
  0x95   :  { %v606_v63 = vrot.slane %v569_v58, %v997_v55  ;;  %v657_v0 = vsub.f32 1.0, %v569_v58  ;;  %v701_v8 = vmul.f32 0.25, %v569_v58  ;;  %v109_v58 = vmin.f32 %v105_v52, 16.0 }
  0x96   :  { %v592_v3 = vrot.slane %v568_v61, %v997_v55  ;;  %v656_v4 = vsub.f32 1.0, %v568_v61  ;;  %v700_v16 = vmul.f32 0.25, %v568_v61 }
  0x97   :  { %218 = vrot.lane.b32.xlu1 %v210_v59, %s886_s4  ;;  %v1013_v5 = vrot.slane %v606_v63, %v997_v55  ;;  %v1016_v6 = vrot.slane %v657_v0, %v997_v55  ;;  %v703_v12 = vmul.f32 0.75, %v657_v0  ;;  %v1070_v63 = vld [vmem:[%s1325_s1 + $0x8] sm:$0xff] }
  0x98   :  { %v1019_v14 = vrot.slane %v592_v3, %v997_v55  ;;  %v1022_v15 = vrot.slane %v656_v4, %v997_v55  ;;  %v702_v17 = vmul.f32 0.75, %v656_v4  ;;  %v328_v3 = vand.u32 2147483647, %v1070_v63 }
  0x99   :  { %v687_v18 = vrot.slane %v1016_v6, %v997_v55  ;;  %v1026_v19 = vadd.f32 %v703_v12, %v701_v8 }
  0x9a   :  { %v673_v20 = vrot.slane %v1022_v15, %v997_v55  ;;  %v1030_v21 = vadd.f32 %v702_v17, %v700_v16  ;;  %v332_v23 = vsub.f32 0.0, %v328_v3 }
  0x9b   :  { %220 = vrot.lane.b32.xlu1 %v211_v62, %s886_s4  ;;  %v209_v62 = vmax.f32 %v109_v58, %v938_v10 }
  0x9c   :  { %v337_v39 = vmul.f32 1.442695, %v332_v23  ;;  %v802_v23 = vpack.i.bf16 %v973_v29, %v967_v25 }
  0x9f   :  { %222 = vrot.lane.b32.xlu1 %v212_v22, %s886_s4  ;;  %v175_v22 = vmin.f32 %v107_v45, %v941_v11 }
  0xa3   :  { %224 = vrot.lane.b32.xlu1 %v213_v27, %s886_s4 }
  0xa7   :  { %186 = vrot.lane.b32.xlu1 %v178_v28, %s886_s4  ;;  %v1078_v28 = vld [vmem:[%s1325_s1 + $0x18] sm:$0xff] }
  0xab   :  { %188 = vrot.lane.b32.xlu1 %v179_v30, %s886_s4 }
  0xaf   :  { %190 = vrot.lane.b32.xlu1 %v180_v31, %s886_s4 }
  0xb3   :  { %192 = vrot.lane.b32.xlu1 %v181_v32, %s886_s4  ;;  %v114_v32 = vsub.f32 %v941_v11, %v935_v9 }
  0xb7   :  { %124 = vrot.lane.b32.xlu1 %v115_v33, %s889_s28 }
  0xbb   :  { %126 = vrot.lane.b32.xlu1 %v116_v34, %s889_s28 }
  0xbf   :  { %128 = vrot.lane.b32.xlu1 %v117_v35, %s889_s28 }
 0x105   :  { %v282_v40 = vpop.permute.xlu1 %281 }
 0x106   :  { %v287_v42 = vsel %vm285_vm1, %v282_v40, 0.0  ;;  %v280_v43 = vpop.permute.xlu0 %279  ;;  %v330_v40 = vand.u32 2147483647, %v1078_v28 }
 0x107   :  { %v286_v47 = vsel %vm285_vm1, %v280_v43, 0.0 }
 0x108   :  { %v288_v48 = vadd.f32 %v287_v42, %v286_v47 }
 0x109   :  { %v219_v49 = vpop.permute.xlu1 %218 }
 0x10a   :  { %289 = vadd.xlane.f32.xlu0 %v288_v48  ;;  %v230_v36 = vsub.f32 %v206_v44, %v219_v49 }
 0x10c   :  { %v234_v53 = vmax.f32 %v230_v36, 0.001  ;;  %v177_v36 = vmin.f32 %v109_v58, %v938_v10  ;;  %v111_v58 = vsub.f32 %v947_v13, %v941_v11 }
 0x10d   :  { %v221_v54 = vpop.permute.xlu1 %220 }
 0x10e   :  { %807 = vrcp.f32 %v234_v53  ;;  %v231_v56 = vsub.f32 %v207_v50, %v221_v54  ;;  %v334_v50 = vsub.f32 0.0, %v330_v40 }
 0x110   :  { %v235_v59 = vmax.f32 %v231_v56, 0.001 }
 0x111   :  { %v223_v51 = vpop.permute.xlu1 %222 }
 0x112   :  { %809 = vrcp.f32 %v235_v59  ;;  %v232_v61 = vsub.f32 %v208_v57, %v223_v51 }
 0x114   :  { %v236_v0 = vmax.f32 %v232_v61, 0.001  ;;  %v341_v61 = vmul.f32 1.442695, %v334_v50 }
 0x115   :  { %v225_v60 = vpop.permute.xlu1 %224 }
 0x116   :  { %811 = vrcp.f32 %v236_v0  ;;  %v233_v1 = vsub.f32 %v209_v62, %v225_v60 }
 0x118   :  { %v808_v4 = vpop.eup %807  ;;  %v237_v8 = vmax.f32 %v233_v1, 0.001 }
 0x119   :  { %v242_v12 = vmul.f32 %v808_v4, %v234_v53  ;;  %v187_v16 = vpop.permute.xlu1 %186 }
 0x11a   :  { %813 = vrcp.f32 %v237_v8  ;;  %v198_v17 = vsub.f32 %v174_v2, %v187_v16  ;;  %v113_v16 = vsub.f32 %v947_v13, %v938_v10 }
 0x11b   :  { %v246_v27 = vsub.f32 2.0, %v242_v12  ;;  %815 = vpow2.f32 %v337_v39 }
 0x11c   :  { %v810_v30 = vpop.eup %809  ;;  %v202_v31 = vmax.f32 %v198_v17, 0.0  ;;  %817 = vpow2.f32 %v341_v61  ;;  %v318_v61 = vmax.f32 %v1078_v28, 0.0 }
 0x11d   :  { %v243_v33 = vmul.f32 %v810_v30, %v235_v59  ;;  %v250_v34 = vmul.f32 %v808_v4, %v246_v27  ;;  %v189_v35 = vpop.permute.xlu1 %188 }
 0x11e   :  { %v199_v37 = vsub.f32 %v175_v22, %v189_v35 }
 0x11f   :  { %v247_v42 = vsub.f32 2.0, %v243_v33  ;;  %v1084_v43 = vmul.f32 %v250_v34, %v202_v31 }
 0x120   :  { %v812_v44 = vpop.eup %811  ;;  %v203_v45 = vmax.f32 %v199_v37, 0.0  ;;  %122 = vrot.lane.b32.xlu0 %v114_v32, %s889_s28 }
 0x121   :  { %v244_v46 = vmul.f32 %v812_v44, %v236_v0  ;;  %v251_v47 = vmul.f32 %v810_v30, %v247_v42  ;;  %415 = vrot.lane.b32.xlu1 %v1084_v43, %s889_s28  ;;  %v191_v48 = vpop.permute.xlu1 %190 }
 0x122   :  { %v200_v49 = vsub.f32 %v176_v38, %v191_v48 }
 0x123   :  { %v248_v41 = vsub.f32 2.0, %v244_v46  ;;  %v1090_v52 = vmul.f32 %v251_v47, %v203_v45 }
 0x124   :  { %v814_v53 = vpop.eup %813  ;;  %v204_v54 = vmax.f32 %v200_v49, 0.0  ;;  %614 = vrot.lane.b32.xlu0 %v1019_v14, %s889_s28 }
 0x125   :  { %v245_v56 = vmul.f32 %v814_v53, %v237_v8  ;;  %v252_v57 = vmul.f32 %v812_v44, %v248_v41  ;;  %417 = vrot.lane.b32.xlu1 %v1090_v52, %s889_s28  ;;  %v193_v59 = vpop.permute.xlu1 %192  ;;  %v816_v4 = vpop.eup %815  ;;  %v316_v44 = vmax.f32 %v1070_v63, 0.0 }
 0x126   :  { %v201_v51 = vsub.f32 %v177_v36, %v193_v59  ;;  %v352_v17 = vadd.f32 1.0, %v816_v4  ;;  %v818_v27 = vpop.eup %817  ;;  %v358_v34 = vand.u32 2147483647, %v816_v4 }
 0x127   :  { %v249_v62 = vsub.f32 2.0, %v245_v56  ;;  %v1098_v0 = vmul.f32 %v252_v57, %v204_v54  ;;  %v370_v13 = vadd.f32 1.0, %v818_v27  ;;  %v373_v40 = vmul.f32 -0.5, %v818_v27 }
 0x128   :  { %v205_v60 = vmax.f32 %v201_v51, 0.0  ;;  %vm359_vm3 = vcmp.lt.f32.partialorder %v358_v34, 0.0004427343  ;;  %v376_v54 = vand.u32 2147483647, %v818_v27 }
 0x129   :  { %v253_v1 = vmul.f32 %v814_v53, %v249_v62  ;;  %419 = vrot.lane.b32.xlu1 %v1098_v0, %s889_s28  ;;  %v125_v14 = vpop.permute.xlu1 %124  ;;  %v374_v36 = vadd.f32 1.0, %v373_v40 }
 0x12a   :  { %v135_v2 = vmax.f32 %v111_v58, %v125_v14  ;;  %v143_v6 = vmin.f32 %v111_v58, %v125_v14  ;;  %vm377_vm5 = vcmp.lt.f32.partialorder %v376_v54, 0.0004427343 }
 0x12b   :  { %v1102_v3 = vmul.f32 %v253_v1, %v205_v60  ;;  %v375_v51 = vmul.f32 %v818_v27, %v374_v36 }
 0x12c   :  { %v139_v8 = vmax.f32 %v135_v2, 1e-06 }
 0x12d   :  { %616 = vrot.lane.b32.xlu1 %v1013_v5, %s889_s28  ;;  %421 = vrot.lane.b32.xlu0 %v1102_v3, %s889_s28  ;;  %v1108_v12 = vpop.permute.xlu1 %126 }
 0x12e   :  { %819 = vrcp.f32 %v139_v8 }
 0x12f   :  { %821 = vlog2.f32 %v352_v17 }
 0x131   :  { %688 = vrot.lane.b32.xlu1 %v673_v20, %s889_s28  ;;  %690 = vrot.lane.b32.xlu0 %v687_v18, %s889_s28  ;;  %v129_v5 = vpop.permute.xlu1 %128  ;;  %v355_v20 = vmul.f32 -0.5, %v816_v4 }
 0x132   :  { %v137_v22 = vmax.f32 %v113_v16, %v129_v5  ;;  %v145_v47 = vmin.f32 %v113_v16, %v129_v5  ;;  %v1142_v5 = vsub.f32 %v935_v9, %v938_v10 }
 0x133   :  { %v356_v31 = vadd.f32 1.0, %v355_v20 }
 0x134   :  { %v141_v30 = vmax.f32 %v137_v22, 1e-06  ;;  %v1147_v22 = vld [vmem:[%s1325_s1] sm:$0xff]  ;;  %v136_v27 = vmax.f32 %v1142_v5, %v1108_v12 }
 0x135   :  { %803 = vrot.lane.b32.xlu1 %v802_v23, %s889_s28  ;;  %499 = vrot.lane.b32.xlu0 %v965_v24, %s889_s28  ;;  %v357_v39 = vmul.f32 %v816_v4, %v356_v31  ;;  %v1136_v4 = vld [vmem:[%s1327_s3] sm:$0x1]  ;;  %v1152_v23 = vld [vmem:[%s1325_s1 + $0x10] sm:$0xff] }
 0x136   :  { %823 = vrcp.f32 %v141_v30 }
 0x137   :  { %825 = vlog2.f32 %v370_v13  ;;  %v329_v13 = vand.u32 2147483647, %v1152_v23 }
 0x138   :  { %v820_v15 = vpop.eup %819 }
 0x139   :  { %501 = vrot.lane.b32.xlu1 %v969_v26, %s889_s28  ;;  %v151_v55 = vmul.f32 %v820_v15, %v139_v8  ;;  %v822_v32 = vpop.eup %821  ;;  %v624_v8 = vand.u32 2147483647, %v1136_v4 }
 0x13a   :  { %v354_v38 = vmul.f32 0.6931472, %v822_v32 }
 0x13b   :  { %v155_v18 = vsub.f32 2.0, %v151_v55  ;;  %v626_v16 = vsub.f32 0.0, %v624_v8  ;;  %v1161_v55 = vld [vmem:[%s1327_s3 + $0x1] sm:$0x1]  ;;  %s890_s3 = smov 1.0  }
 0x13c   :  { %v360_v49 = vsel %vm359_vm3, %v357_v39, %v354_v38  ;;  %v625_v32 = vand.u32 2147483647, %v1161_v55 }
 0x13d   :  { %v159_v33 = vmul.f32 %v820_v15, %v155_v18  ;;  %v628_v17 = vmul.f32 1.442695, %v626_v16  ;;  %v140_v15 = vmax.f32 %v136_v27, 1e-06 }
 0x13f   :  { %v163_v35 = vmul.f32 %v159_v33, %v143_v6  ;;  %827 = vpow2.f32 %v628_v17  ;;  %v333_v6 = vsub.f32 0.0, %v329_v13 }
 0x140   :  { %v824_v37 = vpop.eup %823 }
 0x141   :  { %vm167_vm2 = vcmp.lt.f32.partialorder %v163_v35, 0.0  ;;  %v153_v42 = vmul.f32 %v824_v37, %v141_v30  ;;  %v826_v50 = vpop.eup %825  ;;  %v327_v30 = vand.u32 2147483647, %v1147_v22  ;;  %v339_v34 = vmul.f32 1.442695, %v333_v6 }
 0x142   :  { %v171_v45 = vsel %vm167_vm2, 0.0, %v163_v35  ;;  %v372_v59 = vmul.f32 0.6931472, %v826_v50 }
 0x143   :  { %v320_v46 = vmul.f32 %v171_v45, %v1070_v63  ;;  %v157_v48 = vsub.f32 2.0, %v153_v42  ;;  %v331_v20 = vsub.f32 0.0, %v327_v30 }
 0x144   :  { %v378_v60 = vsel %vm377_vm5, %v375_v51, %v372_v59 }
 0x145   :  { %v161_v41 = vmul.f32 %v824_v37, %v157_v48  ;;  %v324_v53 = vsub.f32 %v316_v44, %v320_v46  ;;  %v335_v33 = vmul.f32 1.442695, %v331_v20  ;;  %v627_v37 = vsub.f32 0.0, %v625_v32 }
 0x147   :  { %v165_v56 = vmul.f32 %v161_v41, %v145_v47  ;;  %v380_v57 = vadd.f32 %v360_v49, %v324_v53  ;;  %v630_v40 = vmul.f32 1.442695, %v627_v37  ;;  %v1170_v47 = vsub.f32 %v935_v9, %v941_v11 }
 0x148   :  { %v582_v11 = vmax.f32 %v1136_v4, 0.0 }
 0x149   :  { %vm169_vm4 = vcmp.lt.f32.partialorder %v165_v56, 0.0  ;;  %v384_v58 = vmul.f32 0.03125, %v380_v57  ;;  %v828_v10 = vpop.eup %827 }
 0x14a   :  { %v173_v62 = vsel %vm169_vm4, 0.0, %v165_v56  ;;  %v632_v18 = vadd.f32 1.0, %v828_v10  ;;  %v635_v39 = vmul.f32 -0.5, %v828_v10  ;;  %v638_v50 = vand.u32 2147483647, %v828_v10 }
 0x14b   :  { %v322_v63 = vmul.f32 %v173_v62, %v1078_v28  ;;  %393 = vrot.lane.b32.xlu1 %v384_v58, %s886_s4  ;;  %v785_v28 = vmul.f32 -1.442695, %v1136_v4 }
 0x14c   :  { %v636_v48 = vadd.f32 1.0, %v635_v39  ;;  %vm1180_vm6 = vcmp.lt.f32.partialorder %v638_v50, 0.0004427343 }
 0x14d   :  { %v326_v1 = vsub.f32 %v318_v61, %v322_v63  ;;  %829 = vpow2.f32 %v785_v28 }
 0x14e   :  { %831 = vrcp.f32 %v140_v15  ;;  %v637_v58 = vmul.f32 %v828_v10, %v636_v48  ;;  %v144_v10 = vmin.f32 %v1142_v5, %v1108_v12 }
 0x14f   :  { %v382_v14 = vadd.f32 %v378_v60, %v326_v1  ;;  %833 = vlog2.f32 %v632_v18 }
 0x150   :  { %835 = vpow2.f32 %v335_v33 }
 0x151   :  { %v386_v2 = vmul.f32 0.03125, %v382_v14  ;;  %837 = vpow2.f32 %v339_v34 }
 0x153   :  { %397 = vrot.lane.b32.xlu1 %v386_v2, %s886_s4 }
 0x157   :  { %v830_v31 = vpop.eup %829 }
 0x158   :  { %v576_v35 = vadd.f32 1.0, %v830_v31  ;;  %v832_v45 = vpop.eup %831 }
 0x159   :  { %v834_v49 = vpop.eup %833  ;;  %v152_v41 = vmul.f32 %v832_v45, %v140_v15 }
 0x15a   :  { %839 = vrcp.f32 %v576_v35  ;;  %v1175_v59 = vpop.eup %835  ;;  %v634_v51 = vmul.f32 0.6931472, %v834_v49 }
 0x15b   :  { %841 = vpow2.f32 %v630_v40  ;;  %v1177_v61 = vpop.eup %837  ;;  %v156_v1 = vsub.f32 2.0, %v152_v41  ;;  %v343_v17 = vadd.f32 1.0, %v1175_v59  ;;  %v346_v5 = vmul.f32 -0.5, %v1175_v59 }
 0x15c   :  { %v640_v28 = vsel %vm1180_vm6, %v637_v58, %v634_v51  ;;  %v361_v30 = vadd.f32 1.0, %v1177_v61  ;;  %v349_v51 = vand.u32 2147483647, %v1175_v59  ;;  %v367_v58 = vand.u32 2147483647, %v1177_v61 }
 0x15d   :  { %v160_v15 = vmul.f32 %v832_v45, %v156_v1  ;;  %v347_v50 = vadd.f32 1.0, %v346_v5 }
 0x15e   :  { %vm1207_vm9 = vcmp.lt.f32.partialorder %v349_v51, 0.0004427343  ;;  %vm1211_vm10 = vcmp.lt.f32.partialorder %v367_v58, 0.0004427343 }
 0x15f   :  { %v164_v35 = vmul.f32 %v160_v15, %v144_v10  ;;  %v583_v10 = vmax.f32 %v1161_v55, 0.0 }
 0x161   :  { %vm168_vm7 = vcmp.lt.f32.partialorder %v164_v35, 0.0 }
 0x164   :  { %v840_v60 = vpop.eup %839 }
 0x165   :  { %v654_v16 = vsub.f32 1.0, %v840_v60  ;;  %v842_v18 = vpop.eup %841 }
 0x166   :  { %v641_v37 = vadd.f32 1.0, %v842_v18 }
 0x193   :  { %v1164_v38 = vpop.permute.xlu1 %415 }
 0x197   :  { %v290_v42 = vpop.xlane.xlu0 %289  ;;  %v1166_v44 = vpop.permute.xlu1 %417 }
 0x198   :  { %v291_v46 = vrot.slane %v290_v42, 4 }
 0x19a   :  { %v292_v36 = vadd.f32 %v291_v46, %v290_v42  ;;  %v364_v42 = vmul.f32 -0.5, %v1177_v61 }
 0x19b   :  { %v123_v53 = vpop.permute.xlu0 %122  ;;  %v1172_v54 = vpop.permute.xlu1 %419 }
 0x19c   :  { %v293_v56 = vrot.slane %v292_v36, 2  ;;  %v134_v57 = vmax.f32 %v1170_v47, %v123_v53  ;;  %v142_v46 = vmin.f32 %v1170_v47, %v123_v53  ;;  %v365_v41 = vadd.f32 1.0, %v364_v42 }
 0x19d   :  { %v348_v47 = vmul.f32 %v1175_v59, %v347_v50  ;;  %v647_v59 = vand.u32 2147483647, %v842_v18 }
 0x19e   :  { %v138_v9 = vmax.f32 %v134_v57, 1e-06  ;;  %v294_v63 = vadd.f32 %v293_v56, %v292_v36  ;;  %v172_v36 = vsel %vm168_vm7, 0.0, %v164_v35  ;;  %v366_v1 = vmul.f32 %v1177_v61, %v365_v41 }
 0x19f   :  { %v615_v14 = vpop.permute.xlu0 %614  ;;  %v1184_v2 = vpop.permute.xlu1 %616  ;;  %v321_v62 = vmul.f32 %v172_v36, %v1152_v23  ;;  %vm648_vm11 = vcmp.lt.f32.partialorder %v647_v59, 0.0004427343 }
 0x1a0   :  { %843 = vrcp.f32 %v138_v9  ;;  %v620_v8 = vmul.f32 %v615_v14, %v1136_v4  ;;  %v295_v27 = vrot.slane %v294_v63, 1  ;;  %v652_v32 = vmul.f32 %v840_v60, %v615_v14 }
 0x1a1   :  { %845 = vlog2.f32 %v343_v17  ;;  %v315_v14 = vmax.f32 %v1147_v22, 0.0  ;;  %v621_v15 = vmul.f32 %v1184_v2, %v1161_v55 }
 0x1a2   :  { %v622_v13 = vsub.f32 %v582_v11, %v620_v8  ;;  %v296_v20 = vadd.f32 %v295_v27, %v294_v63  ;;  %847 = vlog2.f32 %v361_v30  ;;  %v644_v11 = vmul.f32 -0.5, %v842_v18 }
 0x1a3   :  { %v689_v6 = vpop.permute.xlu1 %688  ;;  %849 = vlog2.f32 %v641_v37  ;;  %v317_v63 = vmax.f32 %v1152_v23, 0.0 }
 0x1a4   :  { %v650_v31 = vadd.f32 %v640_v28, %v622_v13  ;;  %v694_v4 = vmul.f32 %v689_v6, %v654_v16  ;;  %787 = vpush %v296_v20  ;;  %v645_v28 = vadd.f32 1.0, %v644_v11 }
 0x1a5   :  { %v325_v30 = vsub.f32 %v317_v63, %v321_v62 }
 0x1a6   :  { %v696_v33 = vadd.f32 %v694_v4, %v652_v32  ;;  %v711_v34 = vrot.slane %v650_v31, %v932_v7  ;;  %v646_v31 = vmul.f32 %v842_v18, %v645_v28 }
 0x1a8   :  { %v698_v39 = vsub.f32 1.0, %v696_v33  ;;  %716 = vrot.lane.b32.xlu1 %v711_v34, %s886_s4 }
 0x1aa   :  { %v844_v40 = vpop.eup %843  ;;  %v729_v12 = vrot.slane %v698_v39, %v932_v7 }
 0x1ab   :  { %v150_v45 = vmul.f32 %v844_v40, %v138_v9  ;;  %v846_v49 = vpop.eup %845 }
 0x1ac   :  { %734 = vrot.lane.b32.xlu1 %v729_v12, %s886_s4  ;;  %v848_v56 = vpop.eup %847  ;;  %v345_v60 = vmul.f32 0.6931472, %v846_v49  ;;  %v1235_v12 = vld [vmem:[%s1326_s2 + $0x8] sm:$0xff] }
 0x1ad   :  { %v154_v48 = vsub.f32 2.0, %v150_v45  ;;  %v363_v53 = vmul.f32 0.6931472, %v848_v56  ;;  %v850_v23 = vpop.eup %849  ;;  %v436_v42 = vand.u32 2147483647, %v1235_v12  ;;  %v1242_v45 = vld [vmem:[%s1326_s2 + $0x10] sm:$0xff] }
 0x1ae   :  { %v351_v61 = vsel %vm1207_vm9, %v348_v47, %v345_v60  ;;  %v643_v6 = vmul.f32 0.6931472, %v850_v23  ;;  %v437_v50 = vand.u32 2147483647, %v1242_v45 }
 0x1af   :  { %v158_v57 = vmul.f32 %v844_v40, %v154_v48  ;;  %v369_v13 = vsel %vm1211_vm10, %v366_v1, %v363_v53  ;;  %v1230_v40 = vld [vmem:[%s1326_s2] sm:$0xff]  ;;  %v440_v36 = vsub.f32 0.0, %v436_v42 }
 0x1b0   :  { %v381_v4 = vadd.f32 %v369_v13, %v325_v30  ;;  %v649_v34 = vsel %vm648_vm11, %v646_v31, %v643_v6  ;;  %v435_v5 = vand.u32 2147483647, %v1230_v40  ;;  %v441_v51 = vsub.f32 0.0, %v437_v50 }
 0x1b1   :  { %v162_v9 = vmul.f32 %v158_v57, %v142_v46  ;;  %v1247_v46 = vld [vmem:[%s1326_s2 + $0x18] sm:$0xff]  ;;  %v445_v57 = vmul.f32 1.442695, %v440_v36  ;;  %v407_v6 = vmax.f32 %v1230_v40, 0.0  ;;  %v409_v50 = vmax.f32 %v1242_v45, 0.0 }
 0x1b2   :  { %v385_v35 = vmul.f32 0.03125, %v381_v4  ;;  %v439_v48 = vsub.f32 0.0, %v435_v5  ;;  %v438_v41 = vand.u32 2147483647, %v1247_v46  ;;  %v447_v11 = vmul.f32 1.442695, %v441_v51  ;;  %v422_v5 = vpop.permute.xlu0 %421 }
 0x1b3   :  { %vm166_vm8 = vcmp.lt.f32.partialorder %v162_v9, 0.0  ;;  %v427_v4 = vmul.f32 %v1164_v38, %v1230_v40  ;;  %v430_v51 = vmul.f32 %v422_v5, %v1247_v46 }
 0x1b4   :  { %v170_v17 = vsel %vm166_vm8, 0.0, %v162_v9  ;;  %v443_v56 = vmul.f32 1.442695, %v439_v48  ;;  %v442_v58 = vsub.f32 0.0, %v438_v41  ;;  %v786_v9 = vmul.f32 -1.442695, %v1161_v55 }
 0x1b5   :  { %v319_v27 = vmul.f32 %v170_v17, %v1147_v22  ;;  %v623_v22 = vsub.f32 %v583_v10, %v621_v15 }
 0x1b6   :  { %v449_v62 = vmul.f32 1.442695, %v442_v58 }
 0x1b7   :  { %v323_v20 = vsub.f32 %v315_v14, %v319_v27  ;;  %v651_v37 = vadd.f32 %v649_v34, %v623_v22  ;;  %v408_v22 = vmax.f32 %v1235_v12, 0.0 }
 0x1b9   :  { %v379_v32 = vadd.f32 %v351_v61, %v323_v20  ;;  %v715_v39 = vrot.slane %v651_v37, %v932_v7 }
 0x1bb   :  { %v383_v33 = vmul.f32 0.03125, %v379_v32 }
 0x1bd   :  { %391 = vrot.lane.b32.xlu0 %v383_v33, %s886_s4  ;;  %v428_v33 = vmul.f32 %v1166_v44, %v1235_v12  ;;  %v431_v12 = vsub.f32 %v407_v6, %v427_v4 }
 0x1bf   :  { %v432_v36 = vsub.f32 %v408_v22, %v428_v33 }
 0x1c1   :  { %395 = vrot.lane.b32.xlu0 %v385_v35, %s886_s4 }
 0x1c5   :  { %718 = vrot.lane.b32.xlu0 %v715_v39, %s886_s4 }
 0x1d5   :  { %s788_s1 = spop %787 }
 0x1d6   :  { %s298_s17 = smax.f32 %s890_s3, %s788_s1 }
 0x1d7   :  { %v299_v18 = vstv %s298_s17 }
 0x1d8   :  { %851 = vrcp.f32 %v299_v18 }
 0x1d9   :  { %853 = vpow2.f32 %v443_v56  ;;  %v429_v56 = vmul.f32 %v1172_v54, %v1242_v45  ;;  %v302_v54 = vsub.f32 1.0, %v1084_v43  ;;  %v305_v45 = vsub.f32 1.0, %v1102_v3 }
 0x1da   :  { %855 = vpow2.f32 %v445_v57  ;;  %v410_v57 = vmax.f32 %v1247_v46, 0.0 }
 0x1db   :  { %857 = vpow2.f32 %v447_v11  ;;  %v804_v11 = vpop.permute.xlu1 %803 }
 0x1dc   :  { %859 = vpow2.f32 %v449_v62 }
 0x1dd   :  { %861 = vpow2.f32 %v786_v9 }
 0x1e2   :  { %v852_v49 = vpop.eup %851 }
 0x1e3   :  { %789 = vpush %v852_v49  ;;  %v854_v63 = vpop.eup %853 }
 0x1e4   :  { %v856_v60 = vpop.eup %855  ;;  %v451_v47 = vadd.f32 1.0, %v854_v63  ;;  %v454_v28 = vmul.f32 -0.5, %v854_v63  ;;  %v457_v30 = vand.u32 2147483647, %v854_v63 }
 0x1e5   :  { %v460_v53 = vadd.f32 1.0, %v856_v60  ;;  %v858_v1 = vpop.eup %857  ;;  %v463_v27 = vmul.f32 -0.5, %v856_v60  ;;  %v466_v10 = vand.u32 2147483647, %v856_v60 }
 0x1e6   :  { %v860_v14 = vpop.eup %859  ;;  %863 = vlog2.f32 %v451_v47  ;;  %v469_v8 = vadd.f32 1.0, %v858_v1  ;;  %v455_v59 = vadd.f32 1.0, %v454_v28  ;;  %v472_v15 = vmul.f32 -0.5, %v858_v1 }
 0x1e7   :  { %865 = vlog2.f32 %v460_v53  ;;  %v862_v16 = vpop.eup %861  ;;  %v478_v17 = vadd.f32 1.0, %v860_v14  ;;  %v464_v61 = vadd.f32 1.0, %v463_v27  ;;  %v481_v20 = vmul.f32 -0.5, %v860_v14 }
 0x1e8   :  { %v577_v23 = vadd.f32 1.0, %v862_v16  ;;  %867 = vlog2.f32 %v469_v8  ;;  %v456_v31 = vmul.f32 %v854_v63, %v455_v59  ;;  %vm1258_vm12 = vcmp.lt.f32.partialorder %v457_v30, 0.0004427343 }
 0x1e9   :  { %869 = vlog2.f32 %v478_v17  ;;  %v465_v37 = vmul.f32 %v856_v60, %v464_v61  ;;  %vm1262_vm13 = vcmp.lt.f32.partialorder %v466_v10, 0.0004427343  ;;  %v473_v42 = vadd.f32 1.0, %v472_v15  ;;  %v691_v17 = vpop.permute.xlu0 %690 }
 0x1ea   :  { %871 = vrcp.f32 %v577_v23  ;;  %v482_v48 = vadd.f32 1.0, %v481_v20  ;;  %v475_v40 = vand.u32 2147483647, %v858_v1  ;;  %v484_v49 = vand.u32 2147483647, %v860_v14 }
 0x1eb   :  { %v474_v9 = vmul.f32 %v858_v1, %v473_v42  ;;  %v433_v28 = vsub.f32 %v409_v50, %v429_v56  ;;  %v434_v1 = vsub.f32 %v410_v57, %v430_v51  ;;  %v806_v23 = vunpack.i.h.bf16 %v804_v11 }
 0x1ec   :  { %v483_v60 = vmul.f32 %v860_v14, %v482_v48  ;;  %vm1275_vm14 = vcmp.lt.f32.partialorder %v475_v40, 0.0004427343  ;;  %vm1279_vm15 = vcmp.lt.f32.partialorder %v484_v49, 0.0004427343  ;;  %v805_v14 = vunpack.i.l.bf16 %v804_v11 }
 0x1ed   :  { %v303_v27 = vsub.f32 1.0, %v1090_v52  ;;  %v304_v59 = vsub.f32 1.0, %v1098_v0  ;;  %v309_v61 = vmul.f32 %v969_v26, %v305_v45  ;;  %v500_v6 = vpop.permute.xlu0 %499  ;;  %v502_v52 = vpop.permute.xlu1 %501  ;;  %v306_v0 = vmul.f32 %v967_v25, %v302_v54 }
 0x1ef   :  { %v307_v4 = vmul.f32 %v973_v29, %v303_v27 }
 0x1f0   :  { %v864_v55 = vpop.eup %863 }
 0x1f1   :  { %v866_v13 = vpop.eup %865  ;;  %v453_v32 = vmul.f32 0.6931472, %v864_v55  ;;  %v394_v29 = vpop.permute.xlu1 %393 }
 0x1f2   :  { %v462_v35 = vmul.f32 0.6931472, %v866_v13  ;;  %v868_v39 = vpop.eup %867 }
 0x1f3   :  { %v870_v38 = vpop.eup %869  ;;  %v459_v44 = vsel %vm1258_vm12, %v456_v31, %v453_v32  ;;  %v471_v62 = vmul.f32 0.6931472, %v868_v39  ;;  %v308_v32 = vmul.f32 %v965_v24, %v304_v59 }
 0x1f4   :  { %v468_v41 = vsel %vm1262_vm13, %v465_v37, %v462_v35  ;;  %v872_v58 = vpop.eup %871  ;;  %v480_v63 = vmul.f32 0.6931472, %v870_v38  ;;  %v487_v46 = vadd.f32 %v459_v44, %v431_v12 }
 0x1f5   :  { %v655_v47 = vsub.f32 1.0, %v872_v58  ;;  %v488_v16 = vadd.f32 %v468_v41, %v432_v36  ;;  %v477_v55 = vsel %vm1275_vm14, %v474_v9, %v471_v62  ;;  %v653_v3 = vmul.f32 %v872_v58, %v1184_v2  ;;  %v398_v48 = vpop.permute.xlu1 %397 }
 0x1f6   :  { %v486_v30 = vsel %vm1279_vm15, %v483_v60, %v480_v63  ;;  %v507_v10 = vmul.f32 %v805_v14, %v487_v46  ;;  %v489_v15 = vadd.f32 %v477_v55, %v433_v28 }
 0x1f7   :  { %v695_v43 = vmul.f32 %v691_v17, %v655_v47  ;;  %v508_v13 = vmul.f32 %v806_v23, %v488_v16  ;;  %v490_v20 = vadd.f32 %v486_v30, %v434_v1 }
 0x1f8   :  { %v509_v39 = vmul.f32 %v500_v6, %v489_v15 }
 0x1f9   :  { %v697_v22 = vadd.f32 %v695_v43, %v653_v3  ;;  %v510_v18 = vmul.f32 %v502_v52, %v490_v20 }
 0x1fb   :  { %v699_v5 = vsub.f32 1.0, %v697_v22 }
 0x1fd   :  { %v733_v24 = vrot.slane %v699_v5, %v932_v7 }
 0x214   :  { %s790_s2 = spop %789 }
 0x215   :  { %v310_v31 = vstv %s790_s2 }
 0x216   :  { %v314_v33 = vmul.f32 %v310_v31, %v309_v61  ;;  %v512_v34 = vmul.f32 %v508_v13, %v310_v31  ;;  %v511_v2 = vmul.f32 %v507_v10, %v310_v31  ;;  %v311_v35 = vmul.f32 %v310_v31, %v306_v0 }
 0x217   :  { %v313_v26 = vmul.f32 %v310_v31, %v308_v32  ;;  %v312_v37 = vmul.f32 %v310_v31, %v307_v4  ;;  %v513_v42 = vmul.f32 %v509_v39, %v310_v31  ;;  %v514_v25 = vmul.f32 %v510_v18, %v310_v31 }
 0x218   :  { %521 = vrot.lane.b32.xlu0 %v512_v34, %s886_s4  ;;  %519 = vrot.lane.b32.xlu1 %v511_v2, %s886_s4  ;;  %v406_v58 = vadd.f32 %v398_v48, %v314_v33 }
 0x219   :  { %v404_v50 = vadd.f32 %v394_v29, %v312_v37 }
 0x21a   :  { %v717_v40 = vpop.permute.xlu1 %716 }
 0x21b   :  { %v722_v11 = vmul.f32 %v717_v40, %v1030_v21 }
 0x21c   :  { %523 = vrot.lane.b32.xlu0 %v513_v42, %s886_s4  ;;  %525 = vrot.lane.b32.xlu1 %v514_v25, %s886_s4 }
 0x21e   :  { %v735_v44 = vpop.permute.xlu1 %734 }
 0x21f   :  { %v740_v63 = vmul.f32 %v735_v44, %v722_v11 }
 0x220   :  { %736 = vrot.lane.b32.xlu0 %v733_v24, %s886_s4 }
 0x221   :  { %v742_v54 = vmul.f32 %v740_v63, %v735_v44 }
 0x22f   :  { %v392_v38 = vpop.permute.xlu0 %391 }
 0x230   :  { %v403_v36 = vadd.f32 %v392_v38, %v311_v35 }
 0x233   :  { %v396_v49 = vpop.permute.xlu0 %395 }
 0x234   :  { %v405_v62 = vadd.f32 %v396_v49, %v313_v26 }
 0x237   :  { %v719_v12 = vpop.permute.xlu0 %718 }
 0x238   :  { %v723_v53 = vmul.f32 %v719_v12, %v1026_v19 }
 0x28a   :  { %v522_v41 = vpop.permute.xlu0 %521  ;;  %v520_v56 = vpop.permute.xlu1 %519 }
 0x28b   :  { %v532_v57 = vadd.f32 %v522_v41, %v404_v50  ;;  %v531_v51 = vadd.f32 %v520_v56, %v403_v36 }
 0x28d   :  { %541 = vrot.lane.b32.xlu1 %v532_v57, %s889_s28  ;;  %539 = vrot.lane.b32.xlu0 %v531_v51, %s889_s28 }
 0x28e   :  { %v524_v7 = vpop.permute.xlu0 %523  ;;  %v526_v9 = vpop.permute.xlu1 %525 }
 0x28f   :  { %v533_v60 = vadd.f32 %v524_v7, %v405_v62  ;;  %v534_v47 = vadd.f32 %v526_v9, %v406_v58 }
 0x291   :  { %543 = vrot.lane.b32.xlu0 %v533_v60, %s889_s28  ;;  %545 = vrot.lane.b32.xlu1 %v534_v47, %s889_s28 }
 0x292   :  { %v737_v8 = vpop.permute.xlu0 %736 }
 0x293   :  { %v741_v45 = vmul.f32 %v737_v8, %v723_v53 }
 0x295   :  { %v743_v21 = vmul.f32 %v741_v45, %v737_v8  ;;  %746 = vrot.lane.b32.xlu0 %v742_v54, %s889_s28 }
 0x297   :  { %748 = vrot.lane.b32.xlu1 %v743_v21, %s889_s28 }
 0x2ff   :  { %v540_v46 = vpop.permute.xlu0 %539  ;;  %v542_v16 = vpop.permute.xlu1 %541 }
 0x300   :  { %v552_v17 = vsel %vm551_vm0, %v540_v46, 0.0  ;;  %v553_v28 = vsel %vm551_vm0, %v542_v16, 0.0 }
 0x301   :  { %v554_v1 = vadd.f32 %v553_v28, %v552_v17 }
 0x303   :  { %v544_v23 = vpop.permute.xlu0 %543  ;;  %v546_v19 = vpop.permute.xlu1 %545 }
 0x304   :  { %v555_v14 = vsel %vm551_vm0, %v544_v23, 0.0  ;;  %v557_v59 = vsel %vm551_vm0, %v546_v19, 0.0 }
 0x305   :  { %v556_v27 = vadd.f32 %v555_v14, %v554_v1 }
 0x307   :  { %v747_v55 = vpop.permute.xlu0 %746  ;;  %v558_v30 = vadd.f32 %v557_v59, %v556_v27 }
 0x308   :  { %v752_v3 = vsel %vm285_vm1, %v747_v55, 0.0 }
 0x309   :  { %559 = vadd.xlane.f32.xlu0 %v558_v30  ;;  %v749_v43 = vpop.permute.xlu1 %748 }
 0x30a   :  { %v753_v61 = vsel %vm285_vm1, %v749_v43, 0.0 }
 0x30b   :  { %v754_v13 = vadd.f32 %v753_v61, %v752_v3 }
 0x30d   :  { %755 = vadd.xlane.f32.xlu1 %v754_v13 }
 0x396   :  { %v560_v10 = vpop.xlane.xlu0 %559 }
 0x397   :  { %v561_v15 = vrot.slane %v560_v10, 4 }
 0x399   :  { %v562_v20 = vadd.f32 %v561_v15, %v560_v10 }
 0x39a   :  { %v756_v6 = vpop.xlane.xlu1 %755 }
 0x39b   :  { %v563_v52 = vrot.slane %v562_v20, 2  ;;  %v757_v31 = vrot.slane %v756_v6, 4 }
 0x39d   :  { %v564_v0 = vadd.f32 %v563_v52, %v562_v20  ;;  %v758_v32 = vadd.f32 %v757_v31, %v756_v6 }
 0x39f   :  { %v759_v4 = vrot.slane %v758_v32, 2  ;;  %v565_v22 = vrot.slane %v564_v0, 1 }
 0x3a1   :  { %v760_v33 = vadd.f32 %v759_v4, %v758_v32  ;;  %v566_v34 = vadd.f32 %v565_v22, %v564_v0 }
 0x3a3   :  { %791 = vpush %v566_v34  ;;  %v761_v2 = vrot.slane %v760_v33, 1 }
 0x3a5   :  { %v762_v35 = vadd.f32 %v761_v2, %v760_v33 }
 0x3a7   :  { %793 = vpush %v762_v35 }
 0x3d4   :  { %s792_s4 = spop %791 }
 0x3d8   :  { %s794_s26 = spop %793 }
 0x3d9   :  { %s764_s27 = smul.f32 0.5, %s794_s26 }
 0x3db   :  { %s765_s28 = sadd.f32 %s792_s4, %s764_s27 }
 0x3dd   :  { %767 = sst [smem:[#allocation2]] %s765_s28 }
 0x3de   :  { %882 = shalt.err (!%p879_p2)
}
 0x3df   :  { %s891_s10 = smov [#allocation2]  }
 0x3e0   :  { %775 = dma.smem_to_hbm %s891_s10, 16, %s1329_s5, [#allocation3]  }
 0x3e1   :  { %883 = dma.done.wait [#allocation3], 16  }
 0x3e2   :  { %884 = vsyncadd [#allocation3], 4294967280 }
 0x3e3   :  { %779 = sfence }
 0x3e4   :  { %780 = vsyncpa [#allocation3], 1 }

</bundles_post_ra>
